<compile_context>
chip_gen: v5e
topology: v5e:2x2
jax: 0.10.0
libtpu: 0.0.40
codegen_flags: <defaults>
</compile_context>

<pallas_src>
import functools

import jax
import jax.numpy as jnp
import numpy as np
from jax.experimental import pallas as pl
from jax.experimental.pallas import tpu as pltpu


EPS = 1e-5
LANE = 128
SUBLANE_BF16 = 16


def _round_up(x, m):
    return (x + m - 1) // m * m


def encoder_kernel(frames_ref, dft_ref, wcg_ref, spec_ref, p_ref, stats_ref):
    # frames_ref : (1, TT, n_fft)   bf16  windowed frames for this time tile
    # dft_ref    : (n_fft, 2*BP)    bf16  [win*cos | -win*sin], lane-padded
    # wcg_ref    : (BP, CP)         bf16  gamma-folded 1x1 conv weight
    # spec_ref   : (1, TT, 2*BP)    bf16  [re | im] output slab
    # p_ref      : (1, TT, CP)      bf16  un-normalized conv output
    # stats_ref  : (1, 1, 2, BP)    f32   per-(batch, outer) [sum(mag); sum(mag^2)]
    ti = pl.program_id(2)
    bp = wcg_ref.shape[0]

    # ---- fused real/imag STFT via one MXU matmul, lane-dense f32 result ----
    reim = jnp.dot(frames_ref[0], dft_ref[...],
                   preferred_element_type=jnp.float32)            # [TT, 2*BP]
    spec_ref[0] = reim.astype(spec_ref.dtype)                     # bf16 store

    re = reim[:, :bp]
    im = reim[:, bp:]
    magsq = re * re + im * im                                     # reused below
    mag = jnp.sqrt(magsq)                                         # [TT, BP] f32

    # ---- gLN phase 1: f32 stats, accumulated across inner time tiles -------
    @pl.when(ti == 0)
    def _():
        stats_ref[...] = jnp.zeros_like(stats_ref)

    stats_ref[0, 0] += jnp.concatenate(
        [jnp.sum(mag, axis=0, keepdims=True),
         jnp.sum(magsq, axis=0, keepdims=True)], axis=0)          # single RMW

    # ---- 1x1 conv with gamma folded into the weight (MXU, bf16 -> f32 acc).
    # The mean / inv_std / beta / bias affine is applied in the XLA epilogue.
    p = jnp.dot(mag.astype(jnp.bfloat16), wcg_ref[...],
                preferred_element_type=jnp.float32)               # [TT, CP]
    p_ref[0] = p.astype(p_ref.dtype)                              # bf16 store


def encoder_forward(x, params, *, frame_size, hop_size, time_tile=512,
                    time_splits=2):
    """x: [B, L] float32 waveform. Returns (spec [B,bins,Tf] c64, w [B,bneck,Tf])."""
    if x.ndim == 1:
        x = x[None, :]
    assert x.ndim == 2
    B, L = x.shape

    n_fft = frame_size
    bins = n_fft // 2 + 1
    bottleneck = params["conv_w"].shape[1]
    bins_pad = _round_up(bins, LANE)
    bneck_pad = _round_up(bottleneck, LANE)

    # --- glue: center/reflect padding + framing (matches torch.stft center=True).
    # Slice+concat framing (copies, no gather): frame t = concat of hop blocks
    # t .. t+k-1 when hop divides n_fft (always true for this module: hop=n_fft/2).
    pad = n_fft // 2
    xp = jnp.pad(x, ((0, 0), (pad, pad)), mode="reflect")
    Lp = L + 2 * pad
    Tf = 1 + (Lp - n_fft) // hop_size
    if n_fft % hop_size == 0:
        k = n_fft // hop_size
        nblk = Tf + k - 1
        xb = xp[:, :nblk * hop_size].reshape(B, nblk, hop_size)
        frames = jnp.concatenate([xb[:, i:i + Tf] for i in range(k)], axis=-1)
    else:
        # TODO(synk): gather fallback only for hop not dividing n_fft (never hit
        # by the module, which always uses hop = n_fft // 2).
        idx = jnp.arange(Tf)[:, None] * hop_size + jnp.arange(n_fft)[None, :]
        frames = xp[:, idx]
    frames = frames.astype(jnp.bfloat16)                          # [B, Tf, n_fft]
    # TODO(synk): assemble frames in-kernel from hop-granular waveform blocks
    # (memory_space=pl.ANY + manual double-buffered DMA) to also remove this
    # frames HBM round trip.

    # --- time tiling: (outer parallel, inner arbitrary) so v7x megacore has
    # work even at B == 1; 256-aligned M keeps the v6e/v7x MXU packed.
    req = max(min(time_tile, Tf), 1)
    align = 256 if req >= 256 else SUBLANE_BF16
    tt = _round_up(req, align)
    num_tt = (Tf + tt - 1) // tt
    n_outer = max(min(time_splits, num_tt), 1)
    num_tt = _round_up(num_tt, n_outer)
    n_inner = num_tt // n_outer
    Tf_pad = num_tt * tt
    if Tf_pad != Tf:
        frames = jnp.pad(frames, ((0, 0), (0, Tf_pad - Tf), (0, 0)))

    # --- padded / fused / bf16 weights (gamma folded into the 1x1 conv) ---
    dft_real, dft_imag = params["dft_real"], params["dft_imag"]   # [n_fft, bins]
    gamma, beta = params["gamma"], params["beta"]                 # [bins]
    conv_w, conv_b = params["conv_w"], params["conv_b"]           # [bins,bk],[bk]

    dft = jnp.zeros((n_fft, 2 * bins_pad), jnp.float32)
    dft = dft.at[:, :bins].set(dft_real)
    dft = dft.at[:, bins_pad:bins_pad + bins].set(dft_imag)
    dft = dft.astype(jnp.bfloat16)

    wcg = jnp.zeros((bins_pad, bneck_pad), jnp.float32)
    wcg = wcg.at[:bins, :bottleneck].set(gamma[:, None] * conv_w)
    wcg = wcg.astype(jnp.bfloat16)

    time_idx = lambda b, to, ti: (b, to * n_inner + ti, 0)
    const_idx = lambda b, to, ti: (0, 0)

    out_shapes = (
        jax.ShapeDtypeStruct((B, Tf_pad, 2 * bins_pad), jnp.bfloat16),   # [re|im]
        jax.ShapeDtypeStruct((B, Tf_pad, bneck_pad), jnp.bfloat16),      # P
        jax.ShapeDtypeStruct((B, n_outer, 2, bins_pad), jnp.float32),    # stats
    )

    # VMEM budget derived from the actual tile footprint (double-buffered
    # blocks + f32 intermediates), clamped to stay within v7x's 64 MiB VMEM.
    buffered = 2 * (tt * n_fft * 2 + n_fft * 2 * bins_pad * 2
                    + bins_pad * bneck_pad * 2
                    + tt * 2 * bins_pad * 2 + tt * bneck_pad * 2
                    + 2 * bins_pad * 4)
    live_f32 = tt * 2 * bins_pad * 4 + 2 * tt * bins_pad * 4
    vmem_limit = int(min(max(buffered + live_f32 + (4 << 20), 16 << 20), 32 << 20))

    slab, p, stats = pl.pallas_call(
        encoder_kernel,
        out_shape=out_shapes,
        grid_spec=pltpu.PrefetchScalarGridSpec(
            num_scalar_prefetch=0,
            grid=(B, n_outer, n_inner),
            in_specs=[
                pl.BlockSpec((1, tt, n_fft), time_idx),
                pl.BlockSpec((n_fft, 2 * bins_pad), const_idx),
                pl.BlockSpec((bins_pad, bneck_pad), const_idx),
            ],
            out_specs=[
                pl.BlockSpec((1, tt, 2 * bins_pad), time_idx),
                pl.BlockSpec((1, tt, bneck_pad), time_idx),
                pl.BlockSpec((1, 1, 2, bins_pad), lambda b, to, ti: (b, to, 0, 0)),
            ],
        ),
        compiler_params=pltpu.CompilerParams(
            dimension_semantics=("parallel", "parallel", "arbitrary"),
            vmem_limit_bytes=vmem_limit,
        ),
    )(frames, dft, wcg)

    # --- gLN finalize (fused by XLA with the slice + affine + transpose epilogue).
    # TODO(synk): single-pass E[x^2]-E[x]^2 in f32 may lose accuracy for very
    # long signals; switch to a compensated scheme if Tf grows very large.
    n_elems = jnp.float32(Tf * bins)
    s = jnp.sum(stats[:, :, 0, :], axis=(1, 2))                   # [B]
    ss = jnp.sum(stats[:, :, 1, :], axis=(1, 2))                  # [B]
    mean = s / n_elems
    var = jnp.maximum(ss / n_elems - mean * mean, 0.0)
    inv_std = jax.lax.rsqrt(var + EPS)                            # [B]

    gw = gamma @ conv_w                                           # [bneck]
    bw = beta @ conv_w + conv_b                                   # [bneck]
    const = bw[None, :] - (mean * inv_std)[:, None] * gw[None, :]  # [B, bneck]

    w = (inv_std[:, None, None] * p[:, :Tf, :bottleneck].astype(jnp.float32)
         + const[:, None, :])
    w = w.transpose(0, 2, 1)                                      # [B, bneck, Tf]

    re = slab[:, :Tf, :bins].astype(jnp.float32)
    im = slab[:, :Tf, bins_pad:bins_pad + bins].astype(jnp.float32)
    spec = jax.lax.complex(re, im).transpose(0, 2, 1)             # [B, bins, Tf]
    # NOTE: downstream code that can consume time-major [B,Tf,bins]/[B,Tf,bneck]
    # should take the pre-transpose tensors (saves two full HBM passes).
    return spec, w


def make_params(key, *, frame_size, bottleneck):
    n_fft = frame_size
    bins = n_fft // 2 + 1

    # sqrt(periodic hann) window, as in cuda_sqrt_hann_window
    n = np.arange(n_fft, dtype=np.float64)
    hann = 0.5 * (1.0 - np.cos(2.0 * np.pi * n / n_fft))
    win = np.sqrt(hann)

    # one-sided DFT matrices with the analysis window folded in
    k = np.arange(bins, dtype=np.float64)
    ang = 2.0 * np.pi * np.outer(n, k) / n_fft                    # [n_fft, bins]
    dft_real = (win[:, None] * np.cos(ang)).astype(np.float32)
    dft_imag = (win[:, None] * (-np.sin(ang))).astype(np.float32)

    # gLN affine + Conv1d(bins, bottleneck, 1).  gamma/beta perturbed away from
    # the module's ones/zeros init so the folded gamma/beta path is exercised.
    kg, kbeta, kw, kb = jax.random.split(key, 4)
    gamma = 1.0 + 0.1 * jax.random.normal(kg, (bins,), jnp.float32)
    beta = 0.1 * jax.random.normal(kbeta, (bins,), jnp.float32)
    bound = 1.0 / np.sqrt(bins)
    conv_w = jax.random.uniform(kw, (bins, bottleneck), jnp.float32, -bound, bound)
    conv_b = jax.random.uniform(kb, (bottleneck,), jnp.float32, -bound, bound)

    return {
        "dft_real": jnp.asarray(dft_real),
        "dft_imag": jnp.asarray(dft_imag),
        "gamma": gamma,
        "beta": beta,
        "conv_w": conv_w,
        "conv_b": conv_b,
    }


def reference_forward(x, params, *, frame_size, hop_size):
    """Pure-JAX reference: exact module semantics, matmuls at bf16/f32-acc."""
    n_fft = frame_size
    pad = n_fft // 2
    xp = jnp.pad(x, ((0, 0), (pad, pad)), mode="reflect")
    Tf = 1 + (xp.shape[1] - n_fft) // hop_size
    idx = jnp.arange(Tf)[:, None] * hop_size + jnp.arange(n_fft)[None, :]
    frames = xp[:, idx].astype(jnp.bfloat16)
    re = jnp.einsum("btn,nk->btk", frames, params["dft_real"].astype(jnp.bfloat16),
                    preferred_element_type=jnp.float32)
    im = jnp.einsum("btn,nk->btk", frames, params["dft_imag"].astype(jnp.bfloat16),
                    preferred_element_type=jnp.float32)
    mag = jnp.sqrt(re * re + im * im)
    mean = jnp.mean(mag, axis=(1, 2), keepdims=True)
    var = jnp.mean((mag - mean) ** 2, axis=(1, 2), keepdims=True)
    normed = (params["gamma"][None, None, :] * (mag - mean) / jnp.sqrt(var + EPS)
              + params["beta"][None, None, :])
    w = jnp.einsum("btk,kc->btc", normed.astype(jnp.bfloat16),
                   params["conv_w"].astype(jnp.bfloat16),
                   preferred_element_type=jnp.float32) + params["conv_b"]
    spec = (re + 1j * im).transpose(0, 2, 1)
    return spec, w.transpose(0, 2, 1)


if __name__ == "__main__":
    # Small shapes consistent with the module: frame_size plays the role of
    # out_channels (= n_fft), bins = frame_size//2 + 1.
    frame_size = 32
    hop_size = frame_size // 2
    bottleneck = 16
    batch, n_samples = 2, 512

    key = jax.random.PRNGKey(0)
    k_x, k_p = jax.random.split(key)
    x = jax.random.normal(k_x, (batch, n_samples), jnp.float32)
    params = make_params(k_p, frame_size=frame_size, bottleneck=bottleneck)

    # time_tile=16 / time_splits=2 -> grid (B, 2, 2): exercises both the outer
    # (megacore-parallel) time split and the inner cross-tile gLN stats
    # accumulation, with time padding on the last inner tile.
    fwd = jax.jit(functools.partial(encoder_forward, frame_size=frame_size,
                                    hop_size=hop_size, time_tile=16,
                                    time_splits=2))
    spec, w = fwd(x, params)
    jax.block_until_ready((spec, w))

    # sanity check against the pure-JAX reference (spec/p are stored in bf16 by
    # the kernel, so tolerances reflect bf16 storage precision).
    spec_ref, w_ref = reference_forward(x, params, frame_size=frame_size,
                                        hop_size=hop_size)
    np.testing.assert_allclose(np.asarray(spec), np.asarray(spec_ref),
                               rtol=1e-2, atol=1e-2)
    np.testing.assert_allclose(np.asarray(w), np.asarray(w_ref),
                               rtol=5e-2, atol=8e-2)

    print("KERNEL_OK")
</pallas_src>

<mosaic_0001>
module attributes {stable_mosaic.version = 11 : i64} {
  func.func @encoder_kernel(%arg0: i32, %arg1: i32, %arg2: i32, %arg3: memref<1x16x32xbf16, #tpu.memory_space<vmem>>, %arg4: memref<32x256xbf16, #tpu.memory_space<vmem>>, %arg5: memref<128x128xbf16, #tpu.memory_space<vmem>>, %arg6: memref<1x16x256xbf16, #tpu.memory_space<vmem>>, %arg7: memref<1x16x128xbf16, #tpu.memory_space<vmem>>, %arg8: memref<1x1x2x128xf32, #tpu.memory_space<vmem>>) attributes {dimension_semantics = [#tpu.dimension_semantics<parallel>, #tpu.dimension_semantics<parallel>, #tpu.dimension_semantics<arbitrary>], iteration_bounds = array<i64: 2, 2, 2>, scalar_prefetch = 0 : i64, scratch_operands = 0 : i64, tpu.core_type = #tpu.core_type<tc>, window_params = [{transform_indices = @transform_0, window_bounds = array<i64: 1, 16, 32>}, {pipeline_mode = #tpu.pipeline_mode<synchronous>, transform_indices = @transform_1, window_bounds = array<i64: 32, 256>}, {pipeline_mode = #tpu.pipeline_mode<synchronous>, transform_indices = @transform_2, window_bounds = array<i64: 128, 128>}, {transform_indices = @transform_3, window_bounds = array<i64: 1, 16, 256>}, {transform_indices = @transform_4, window_bounds = array<i64: 1, 16, 128>}, {transform_indices = @transform_5, window_bounds = array<i64: 1, 1, 2, 128>}]} {
    %c0 = arith.constant 0 : index
    %c0_0 = arith.constant 0 : index
    %c0_1 = arith.constant 0 : index
    %0 = vector.load %arg3[%c0, %c0_0, %c0_1] : memref<1x16x32xbf16, #tpu.memory_space<vmem>>, vector<1x16x32xbf16>
    %1 = vector.shape_cast %0 : vector<1x16x32xbf16> to vector<16x32xbf16>
    %c0_2 = arith.constant 0 : index
    %c0_3 = arith.constant 0 : index
    %2 = vector.load %arg4[%c0_2, %c0_3] : memref<32x256xbf16, #tpu.memory_space<vmem>>, vector<32x256xbf16>
    %cst = arith.constant dense<0.000000e+00> : vector<16x256xf32>
    %3 = tpu.matmul %1, %2, %cst {dimension_numbers = #tpu.dot_dimension_numbers<[1], [0], [0], [1], [0, 0, 1, 1], [], []>} : vector<16x32xbf16>, vector<32x256xbf16>, vector<16x256xf32> -> vector<16x256xf32>
    %4 = arith.truncf %3 : vector<16x256xf32> to vector<16x256xbf16>
    %c0_4 = arith.constant 0 : index
    %c0_5 = arith.constant 0 : index
    %c0_6 = arith.constant 0 : index
    %5 = vector.load %arg6[%c0_4, %c0_5, %c0_6] : memref<1x16x256xbf16, #tpu.memory_space<vmem>>, vector<1x16x256xbf16>
    %6 = vector.shape_cast %5 : vector<1x16x256xbf16> to vector<16x256xbf16>
    %7 = vector.shape_cast %4 : vector<16x256xbf16> to vector<1x16x256xbf16>
    tpu.vector_store %arg6[%c0_4, %c0_5, %c0_6], %7 {strides = array<i32>} : memref<1x16x256xbf16, #tpu.memory_space<vmem>>, vector<1x16x256xbf16>,
    %8 = vector.extract_strided_slice %3 {offsets = [0, 0], sizes = [16, 128], strides = [1, 1]} : vector<16x256xf32> to vector<16x128xf32>
    %9 = vector.extract_strided_slice %3 {offsets = [0, 128], sizes = [16, 128], strides = [1, 1]} : vector<16x256xf32> to vector<16x128xf32>
    %10 = arith.mulf %8, %8 : vector<16x128xf32>
    %11 = arith.mulf %9, %9 : vector<16x128xf32>
    %12 = arith.addf %10, %11 : vector<16x128xf32>
    %13 = math.sqrt %12 : vector<16x128xf32>
    %c0_i32 = arith.constant 0 : i32
    %14 = arith.cmpi eq, %arg2, %c0_i32 : i32
    %15 = arith.extui %14 : i1 to i32
    %c0_i32_7 = arith.constant 0 : i32
    %16 = arith.cmpi ne, %15, %c0_i32_7 : i32
    scf.if %16 {
      %cst_24 = arith.constant 0.000000e+00 : f32
      %35 = vector.broadcast %cst_24 : f32 to vector<1x1x2x128xf32>
      %c0_25 = arith.constant 0 : index
      %c0_26 = arith.constant 0 : index
      %c0_27 = arith.constant 0 : index
      %c0_28 = arith.constant 0 : index
      %36 = vector.load %arg8[%c0_25, %c0_26, %c0_27, %c0_28] : memref<1x1x2x128xf32, #tpu.memory_space<vmem>>, vector<1x1x2x128xf32>
      tpu.vector_store %arg8[%c0_25, %c0_26, %c0_27, %c0_28], %35 {strides = array<i32>} : memref<1x1x2x128xf32, #tpu.memory_space<vmem>>, vector<1x1x2x128xf32>,
    } else {
    }
    %c0_8 = arith.constant 0 : index
    %c0_9 = arith.constant 0 : index
    %c0_10 = arith.constant 0 : index
    %c0_11 = arith.constant 0 : index
    %17 = vector.load %arg8[%c0_8, %c0_9, %c0_10, %c0_11] : memref<1x1x2x128xf32, #tpu.memory_space<vmem>>, vector<1x1x2x128xf32>
    %18 = vector.shape_cast %17 : vector<1x1x2x128xf32> to vector<2x128xf32>
    %cst_12 = arith.constant dense<0.000000e+00> : vector<128xf32>
    %19 = vector.multi_reduction <add>, %13, %cst_12 [0] : vector<16x128xf32> to vector<128xf32>
    %20 = vector.shape_cast %19 : vector<128xf32> to vector<1x128xf32>
    %cst_13 = arith.constant dense<0.000000e+00> : vector<128xf32>
    %21 = vector.multi_reduction <add>, %12, %cst_13 [0] : vector<16x128xf32> to vector<128xf32>
    %22 = vector.shape_cast %21 : vector<128xf32> to vector<1x128xf32>
    %23 = tpu.concatenate %20, %22 in 0 : vector<1x128xf32>, vector<1x128xf32> -> vector<2x128xf32>
    %24 = arith.addf %18, %23 : vector<2x128xf32>
    %c0_14 = arith.constant 0 : index
    %c0_15 = arith.constant 0 : index
    %c0_16 = arith.constant 0 : index
    %c0_17 = arith.constant 0 : index
    %25 = vector.load %arg8[%c0_14, %c0_15, %c0_16, %c0_17] : memref<1x1x2x128xf32, #tpu.memory_space<vmem>>, vector<1x1x2x128xf32>
    %26 = vector.shape_cast %25 : vector<1x1x2x128xf32> to vector<2x128xf32>
    %27 = vector.shape_cast %24 : vector<2x128xf32> to vector<1x1x2x128xf32>
    tpu.vector_store %arg8[%c0_14, %c0_15, %c0_16, %c0_17], %27 {strides = array<i32>} : memref<1x1x2x128xf32, #tpu.memory_space<vmem>>, vector<1x1x2x128xf32>,
    %28 = arith.truncf %13 : vector<16x128xf32> to vector<16x128xbf16>
    %c0_18 = arith.constant 0 : index
    %c0_19 = arith.constant 0 : index
    %29 = vector.load %arg5[%c0_18, %c0_19] : memref<128x128xbf16, #tpu.memory_space<vmem>>, vector<128x128xbf16>
    %cst_20 = arith.constant dense<0.000000e+00> : vector<16x128xf32>
    %30 = tpu.matmul %28, %29, %cst_20 {dimension_numbers = #tpu.dot_dimension_numbers<[1], [0], [0], [1], [0, 0, 1, 1], [], []>} : vector<16x128xbf16>, vector<128x128xbf16>, vector<16x128xf32> -> vector<16x128xf32>
    %31 = arith.truncf %30 : vector<16x128xf32> to vector<16x128xbf16>
    %c0_21 = arith.constant 0 : index
    %c0_22 = arith.constant 0 : index
    %c0_23 = arith.constant 0 : index
    %32 = vector.load %arg7[%c0_21, %c0_22, %c0_23] : memref<1x16x128xbf16, #tpu.memory_space<vmem>>, vector<1x16x128xbf16>
    %33 = vector.shape_cast %32 : vector<1x16x128xbf16> to vector<16x128xbf16>
    %34 = vector.shape_cast %31 : vector<16x128xbf16> to vector<1x16x128xbf16>
    tpu.vector_store %arg7[%c0_21, %c0_22, %c0_23], %34 {strides = array<i32>} : memref<1x16x128xbf16, #tpu.memory_space<vmem>>, vector<1x16x128xbf16>,
    return
  }
  func.func @transform_0(%arg0: i32, %arg1: i32, %arg2: i32) -> (i32, i32, i32) {
    %c2_i32 = arith.constant 2 : i32
    %0 = arith.muli %arg1, %c2_i32 : i32
    %1 = arith.addi %0, %arg2 : i32
    %c0_i32 = arith.constant 0 : i32
    %c0_i32_0 = arith.constant 0 : i32
    return %arg0, %1, %c0_i32 : i32, i32, i32
  }
  func.func @transform_1(%arg0: i32, %arg1: i32, %arg2: i32) -> (i32, i32) {
    %c0_i32 = arith.constant 0 : i32
    %c0_i32_0 = arith.constant 0 : i32
    %c0_i32_1 = arith.constant 0 : i32
    return %c0_i32, %c0_i32_0 : i32, i32
  }
  func.func @transform_2(%arg0: i32, %arg1: i32, %arg2: i32) -> (i32, i32) {
    %c0_i32 = arith.constant 0 : i32
    %c0_i32_0 = arith.constant 0 : i32
    %c0_i32_1 = arith.constant 0 : i32
    return %c0_i32, %c0_i32_0 : i32, i32
  }
  func.func @transform_3(%arg0: i32, %arg1: i32, %arg2: i32) -> (i32, i32, i32) {
    %c2_i32 = arith.constant 2 : i32
    %0 = arith.muli %arg1, %c2_i32 : i32
    %1 = arith.addi %0, %arg2 : i32
    %c0_i32 = arith.constant 0 : i32
    %c0_i32_0 = arith.constant 0 : i32
    return %arg0, %1, %c0_i32 : i32, i32, i32
  }
  func.func @transform_4(%arg0: i32, %arg1: i32, %arg2: i32) -> (i32, i32, i32) {
    %c2_i32 = arith.constant 2 : i32
    %0 = arith.muli %arg1, %c2_i32 : i32
    %1 = arith.addi %0, %arg2 : i32
    %c0_i32 = arith.constant 0 : i32
    %c0_i32_0 = arith.constant 0 : i32
    return %arg0, %1, %c0_i32 : i32, i32, i32
  }
  func.func @transform_5(%arg0: i32, %arg1: i32, %arg2: i32) -> (i32, i32, i32, i32) {
    %c0_i32 = arith.constant 0 : i32
    %c0_i32_0 = arith.constant 0 : i32
    %c0_i32_1 = arith.constant 0 : i32
    return %arg0, %arg1, %c0_i32, %c0_i32_0 : i32, i32, i32, i32
  }
}

</mosaic_0001>

<bundles_post_ra>
// kernel: custom-call
= control target key start
LH: loop header
LB: loop body
LE: loop exit
PB: predicated region body
PF: predicated region fallthrough
CT: control target
= control target key end

     0   :  { %s261_s0 = inlined_call_operand.vmem [shape: f32[2,17,33], index: 0, kind: input, shape index: {}]   ;;  %s262_s2 = inlined_call_operand.vmem [shape: c64[2,17,33], index: 2, kind: output, shape index: {}]   ;;  %s263_s1 = inlined_call_operand.vmem [shape: f32[2,17,33], index: 1, kind: input, shape index: {}]  }
   0x1   :  { %v4_v0 = vld [vmem:[%s261_s0] sm:$0xff]  ;;  %v89_v1 = vld [vmem:[%s261_s0 + $0x8] sm:$0xff]  ;;  %v91_v2 = vld [vmem:[%s261_s0 + $0x10] sm:$0xff] }
   0x2   :  { %5 = vst [vmem:[%s262_s2] sm:$0xff] %v4_v0  ;;  %v93_v3 = vld [vmem:[%s261_s0 + $0x18] sm:$0xff]  ;;  %v95_v4 = vld [vmem:[%s261_s0 + $0x20] sm:$0xff]  ;;  %v97_v5 = vld [vmem:[%s261_s0 + $0x28] sm:$0xff] }
   0x3   :  { %90 = vst [vmem:[%s262_s2 + $0x8] sm:$0xff] %v89_v1  ;;  %v99_v6 = vld [vmem:[%s261_s0 + $0x30] sm:$0xff]  ;;  %v101_v7 = vld [vmem:[%s261_s0 + $0x38] sm:$0xff]  ;;  %v103_v8 = vld [vmem:[%s261_s0 + $0x40] sm:$0xff] }
   0x4   :  { %92 = vst [vmem:[%s262_s2 + $0x10] sm:$0xff] %v91_v2  ;;  %v105_v9 = vld [vmem:[%s261_s0 + $0x48] sm:$0xff]  ;;  %v42_v10 = vld [vmem:[%s263_s1] sm:$0xff]  ;;  %v110_v12 = vld [vmem:[%s263_s1 + $0x10] sm:$0xff] }
   0x5   :  { %94 = vst [vmem:[%s262_s2 + $0x18] sm:$0xff] %v93_v3  ;;  %v108_v11 = vld [vmem:[%s263_s1 + $0x8] sm:$0xff]  ;;  %v112_v13 = vld [vmem:[%s263_s1 + $0x18] sm:$0xff]  ;;  %v114_v14 = vld [vmem:[%s263_s1 + $0x20] sm:$0xff] }
   0x6   :  { %96 = vst [vmem:[%s262_s2 + $0x20] sm:$0xff] %v95_v4  ;;  %v116_v15 = vld [vmem:[%s263_s1 + $0x28] sm:$0xff]  ;;  %v118_v16 = vld [vmem:[%s263_s1 + $0x30] sm:$0xff]  ;;  %v120_v17 = vld [vmem:[%s263_s1 + $0x38] sm:$0xff] }
   0x7   :  { %98 = vst [vmem:[%s262_s2 + $0x28] sm:$0xff] %v97_v5  ;;  %v122_v18 = vld [vmem:[%s263_s1 + $0x40] sm:$0xff]  ;;  %v124_v19 = vld [vmem:[%s263_s1 + $0x48] sm:$0xff] }
   0x8   :  { %100 = vst [vmem:[%s262_s2 + $0x30] sm:$0xff] %v99_v6 }
   0x9   :  { %102 = vst [vmem:[%s262_s2 + $0x38] sm:$0xff] %v101_v7 }
   0xa   :  { %104 = vst [vmem:[%s262_s2 + $0x40] sm:$0xff] %v103_v8 }
   0xb   :  { %106 = vst [vmem:[%s262_s2 + $0x48] sm:$0xff] %v105_v9 }
   0xc   :  { %107 = vst [vmem:[%s262_s2 + $0x50] sm:$0xff] %v42_v10 }
   0xd   :  { %109 = vst [vmem:[%s262_s2 + $0x58] sm:$0xff] %v108_v11 }
   0xe   :  { %111 = vst [vmem:[%s262_s2 + $0x60] sm:$0xff] %v110_v12 }
   0xf   :  { %113 = vst [vmem:[%s262_s2 + $0x68] sm:$0xff] %v112_v13 }
  0x10   :  { %115 = vst [vmem:[%s262_s2 + $0x70] sm:$0xff] %v114_v14 }
  0x11   :  { %117 = vst [vmem:[%s262_s2 + $0x78] sm:$0xff] %v116_v15 }
  0x12   :  { %119 = vst [vmem:[%s262_s2 + $0x80] sm:$0xff] %v118_v16 }
  0x13   :  { %121 = vst [vmem:[%s262_s2 + $0x88] sm:$0xff] %v120_v17 }
  0x14   :  { %123 = vst [vmem:[%s262_s2 + $0x90] sm:$0xff] %v122_v18 }
  0x15   :  { %125 = vst [vmem:[%s262_s2 + $0x98] sm:$0xff] %v124_v19 }

// kernel: encoder_forward.1
= control target key start
LH: loop header
LB: loop body
LE: loop exit
PB: predicated region body
PF: predicated region fallthrough
CT: control target
= control target key end

     0   :  { %s1016_s18 = smov 0   ;;  %s1018_s19 = smov 0   ;;  %s1160_s0 = inlined_call_operand.vmem [shape: bf16[2,64,32], index: 0, kind: input, shape index: {}]   ;;  %s1161_s1 = inlined_call_operand.vmem [shape: bf16[32,256], index: 1, kind: input, shape index: {}]   ;;  %s1162_s2 = inlined_call_operand.vmem [shape: bf16[128,128], index: 2, kind: input, shape index: {}]   ;;  %s1163_s3 = inlined_call_operand.vmem [shape: bf16[2,64,256], index: 3, kind: output, shape index: {0}]   ;;  %s1164_s4 = inlined_call_operand.vmem [shape: bf16[2,64,128], index: 4, kind: output, shape index: {1}]   ;;  %s1165_s5 = inlined_call_operand.vmem [shape: f32[2,2,2,128], index: 5, kind: output, shape index: {2}]  }
   0x1   :  { %1166 = sst [smem:[#allocation3_spill]] %s1161_s1  ;;  %s1020_s20 = smov 0  }
   0x2   :  { %s1022_s21 = smov 0   ;;  %s1024_s22 = smov 0  }
   0x3   :  { %s1026_s23 = smov 0   ;;  %s1028_s24 = smov 0  }
   0x4 LB: > { %s28_s25 = sadd.s32 1, %s971_s21  ;;  %s31_s26 = sadd.s32 1, %s975_s22  ;;  %s983_s24 = sphi %s1028_s24, %s16_s24   ;;  %s979_s23 = sphi %s1026_s23, %s1175_s23   ;;  %s975_s22 = sphi %s1024_s22, %s1174_s22   ;;  %s971_s21 = sphi %s1022_s21, %s1173_s21   ;;  %s967_s20 = sphi %s1020_s20, %s1172_s20   ;;  %s963_s19 = sphi %s1018_s19, %s1171_s19   ;;  %s959_s18 = sphi %s1016_s18, %s1170_s18  }
   0x5   : > { %p29_p0 = scmp.ge.s32.totalorder %s28_s25, 2  ;;  %p777_p1 = scmp.ge.s32.totalorder %s983_s24, 1 }
   0x6   : > { %p240_p2 = scmp.lt.s32.totalorder %s983_s24, 9  ;;  %s35_s27 = sadd.s32 1, %s979_s23 }
   0x7   : > { %s1177_s25 = smov (%p29_p0, %s28_s25), 0  ;;  %s1179_s26 = smov (!%p29_p0, %s31_s26), %s975_s22 }
   0x8   : > { %p241_p3 = pnand %p777_p1, %p240_p2  ;;  %p33_p4 = scmp.ge.s32.totalorder %s1179_s26, 2 }
   0x9   : > { %s1168_s1 = sld [smem:[#allocation3_spill]] (!%p241_p3)  ;;  %s778_s29 = sshll.u32 (!%p241_p3), %s963_s19, 1 }
   0xa   : > { %s1181_s26 = smov (%p33_p4, %s1179_s26), 0  ;;  %s1183_s27 = smov (!%p33_p4, %s35_s27), %s979_s23 }
   0xb   : > { %p37_p5 = scmp.ge.s32.totalorder %s1183_s27, 2  ;;  %244 = sbr.rel (%p241_p3) target bundleno = 363 (0x16b), region = 32 }
   0xc   : > { %p303_p6 = scmp.lt.s32.totalorder (!%p241_p3), %s967_s20, 1  ;;  %s301_s30 = sadd.s32 (!%p241_p3), %s959_s18, %s778_s29 }
   0xd   : > { %s1185_s27 = smov (%p37_p5, %s1183_s27), 0  ;;  %s779_s6 = sshll.u32 (!%p241_p3), %s301_s30, 1 }
   0xe   : > { %1167 = sst [smem:[#allocation2_spill]] %s1185_s27  ;;  %p345_p7 = scmp.lt.s32.totalorder (!%p241_p3), %s963_s19, 1 }
   0xf   : > { %p305_p8 = scmp.lt.s32.totalorder (!%p241_p3), %s779_s6, 7  ;;  %p815_p9 = scmp.ne.s32.totalorder (!%p241_p3), %s959_s18, 0 }
  0x10   : > { %v807_v0 = vld [vmem:[%s1168_s1 + $0x10] sm:$0xf]  ;;  %v854_v1 = vld [vmem:[%s1168_s1 + $0x14] sm:$0xf0]  ;;  %v853_v2 = vld [vmem:[%s1168_s1 + $0x14] sm:$0xf] }
  0x11   : > { %v808_v3 = vor.u32 %v854_v1, %v807_v0  ;;  %v809_v4 = vld [vmem:[%s1168_s1 + $0x18] sm:$0xf0]  ;;  %v799_v5 = vld [vmem:[%s1168_s1] sm:$0xf]  ;;  %v852_v6 = vld [vmem:[%s1168_s1 + $0x4] sm:$0xf0] }
  0x12   : > { %v812_v7 = vor.u32 %v853_v2, %v809_v4  ;;  %v851_v8 = vld [vmem:[%s1168_s1 + $0x4] sm:$0xf]  ;;  %v801_v9 = vld [vmem:[%s1168_s1 + $0x8] sm:$0xf0]  ;;  %v800_v10 = vor.u32 %v852_v6, %v799_v5  ;;  %s1187_s20 = smov (!%p303_p6, %s967_s20), 1  ;;  %s1189_s6 = smov (!%p305_p8, %s779_s6), 7 }
  0x13   : > { %393 = vmatpush.bf16.msra.mxu0 %v808_v3  ;;  %v804_v11 = vor.u32 %v851_v8, %v801_v9  ;;  %s780_s7 = sshll.u32 %s1187_s20, 3  ;;  %s791_s8 = sshll.u32 %s1187_s20, 1  ;;  %vm383_vm0 = vcmask 261120  }
  0x14   : > { %407 = vmatpush.bf16.msra.mxu1 %v812_v7  ;;  %s1191_s19 = smov (!%p345_p7, %s963_s19), 1  ;;  %s308_s9 = sadd.s32 %s780_s7, %s1189_s6 }
  0x15   : > { %s781_s10 = sshll.u32 %s308_s9, 2  ;;  %s348_s11 = sadd.s32 %s791_s8, %s1191_s19 }
  0x16   : > { %s310_s14 = scalar_lea.vmem %s1160_s0, %s781_s10  ;;  %s1100_s17 = scalar_lea.vmem %s1164_s4, %s781_s10 }
  0x17   : > { %394 = vmatpush.bf16.msra.mxu0 %v800_v10  ;;  %s792_s28 = sshll.u32 %s348_s11, 1  ;;  %v850_v12 = vld [vmem:[%s310_s14] sm:$0xff]  ;;  %s784_s29 = sshll.u32 %s1189_s6, 1 }
  0x18   : > { %408 = vmatpush.bf16.msra.mxu1 %v804_v11  ;;  %s1105_s27 = scalar_lea.vmem %s1165_s5, %s792_s28  ;;  %s785_s7 = sshll.u32 %s1187_s20, 4 }
  0x19   : > { %s323_s19 = sadd.s32 %s785_s7, %s784_s29 }
  0x1a   : > { %813 = vmatmul.msk.bf16.vlgmr.msra.gmra.mxu0 %vm383_vm0, %v850_v12  ;;  %s786_s8 = sshll.u32 %s323_s19, 2 }
  0x1b   : > { %814 = vmatmul.msk.bf16.vlgmr.msra.gmra.mxu1 %vm383_vm0, %v850_v12  ;;  %s325_s10 = scalar_lea.vmem %s1163_s3, %s786_s8 }
  0x97   : > { %v396_v13 = vpop.f32.mrf.mxu0 }
  0x98   : > { %v410_v14 = vpop.f32.mrf.mxu1  ;;  %v419_v15 = vmul.f32 %v396_v13, %v396_v13 }
  0x99   : > { %v415_v16 = vpack.c.bf16 %v410_v14, %v396_v13  ;;  %v421_v17 = vmul.f32 %v410_v14, %v410_v14 }
  0x9b   : > { %v423_v18 = vadd.f32 %v421_v17, %v419_v15  ;;  %417 = vst [vmem:[%s325_s10] sm:$0xff] %v415_v16 }
  0x9d   : > { %925 = vrsqrt.f32 %v423_v18  ;;  %vm432_vm1 = vcmp.eq.f32.partialorder %v423_v18, inf  ;;  %v435_v35 = vand.u32 2147483648, %v423_v18  ;;  %vm434_vm2 = vcmp.eq.f32.partialorder %v423_v18, 0.0 }
  0x9f   : > { %v398_v19 = vpop.f32.mrf.mxu0 }
  0xa0   : > { %v412_v20 = vpop.f32.mrf.mxu1  ;;  %v420_v21 = vmul.f32 %v398_v19, %v398_v19 }
  0xa1   : > { %v416_v22 = vpack.c.bf16 %v412_v20, %v398_v19  ;;  %v422_v23 = vmul.f32 %v412_v20, %v412_v20 }
  0xa3   : > { %v926_v24 = vpop.eup %925  ;;  %418 = vst [vmem:[%s325_s10 + $0x8] sm:$0xff] %v416_v22  ;;  %v424_v25 = vadd.f32 %v422_v23, %v420_v21 }
  0xa4   : > { %v426_v26 = vmul.f32 %v926_v24, %v423_v18 }
  0xa5   : > { %927 = vrsqrt.f32 %v424_v25  ;;  %vm444_vm3 = vcmp.eq.f32.partialorder %v424_v25, inf  ;;  %v447_v42 = vand.u32 2147483648, %v424_v25  ;;  %vm446_vm4 = vcmp.eq.f32.partialorder %v424_v25, 0.0 }
  0xa6   : > { %v427_v27 = vmul.f32 %v926_v24, %v426_v26 }
  0xa8   : > { %v428_v28 = vmul.f32 0.5, %v427_v27 }
  0xaa   : > { %v429_v29 = vsub.f32 1.5, %v428_v28 }
  0xab   : > { %v928_v30 = vpop.eup %927 }
  0xac   : > { %v430_v31 = vmul.f32 %v926_v24, %v429_v29  ;;  %v438_v32 = vmul.f32 %v928_v30, %v424_v25 }
  0xae   : > { %v431_v33 = vmul.f32 %v430_v31, %v423_v18  ;;  %v439_v34 = vmul.f32 %v928_v30, %v438_v32 }
  0xb0   : > { %v433_v36 = vsel %vm432_vm1, %v423_v18, %v431_v33  ;;  %v440_v37 = vmul.f32 0.5, %v439_v34 }
  0xb1   : > { %v436_v38 = vsel %vm434_vm2, %v435_v35, %v433_v36 }
  0xb2   : > { %v441_v39 = vsub.f32 1.5, %v440_v37 }
  0xb4   : > { %v442_v40 = vmul.f32 %v928_v30, %v441_v39 }
  0xb5   : > { %452 = sbr.rel (%p815_p9) target bundleno = 188 (0xbc), region = 36 }
  0xb6   : > { %v443_v41 = vmul.f32 %v442_v40, %v424_v25 }
  0xb8   : > { %v445_v43 = vsel %vm444_vm3, %v424_v25, %v443_v41 }
  0xb9   : > { %v448_v44 = vsel %vm446_vm4, %v447_v42, %v445_v43 }
  0xba   : > { %v985_v45 = vmov 0.0  }
  0xbb   : > { %453 = vst [vmem:[%s1105_s27] sm:$0x3] %v985_v45 }
  0xbc PF: > { %v455_v46 = vadd.f32 %v448_v44, %v436_v38  ;;  %v462_v47 = vadd.f32 %v424_v25, %v423_v18  ;;  %v862_v48 = vld [vmem:[%s1162_s2 + $0x38] sm:$0xff]  ;;  %v861_v51 = vld [vmem:[%s1162_s2 + $0x30] sm:$0xff]  ;;  %v860_v56 = vld [vmem:[%s1162_s2 + $0x28] sm:$0xff]  ;;  %vm469_vm5 = vcmask 1040384   ;;  %v473_v7 = vpack.c.bf16 %v448_v44, %v436_v38 }
  0xbd   : > { %538 = vmatpush.bf16.msra.mxu2 %v862_v48  ;;  %v859_v61 = vld [vmem:[%s1162_s2 + $0x20] sm:$0xff]  ;;  %v858_v2 = vld [vmem:[%s1162_s2 + $0x18] sm:$0xff]  ;;  %v857_v4 = vld [vmem:[%s1162_s2 + $0x10] sm:$0xff] }
  0xbe   : > { %v456_v49 = vrot.slane %v455_v46, 4  ;;  %v463_v50 = vrot.slane %v462_v47, 4  ;;  %v856_v5 = vld [vmem:[%s1162_s2 + $0x8] sm:$0xff]  ;;  %v855_v6 = vld [vmem:[%s1162_s2] sm:$0xff] }
  0xc0   : > { %v457_v52 = vadd.f32 %v456_v49, %v455_v46  ;;  %v464_v53 = vadd.f32 %v463_v50, %v462_v47 }
  0xc1   : > { %539 = vmatpush.bf16.msra.mxu2 %v861_v51 }
  0xc2   : > { %v458_v54 = vrot.slane %v457_v52, 2  ;;  %v465_v55 = vrot.slane %v464_v53, 2  ;;  %v454_v62 = vld [vmem:[%s1105_s27] sm:$0x3] }
  0xc4   : > { %v459_v57 = vadd.f32 %v458_v54, %v457_v52  ;;  %v466_v58 = vadd.f32 %v465_v55, %v464_v53 }
  0xc5   : > { %540 = vmatpush.bf16.msra.mxu2 %v860_v56 }
  0xc6   : > { %v460_v59 = vrot.slane %v459_v57, 1  ;;  %v467_v60 = vrot.slane %v466_v58, 1 }
  0xc8   : > { %v461_v63 = vadd.f32 %v460_v59, %v459_v57  ;;  %v468_v0 = vadd.f32 %v467_v60, %v466_v58 }
  0xc9   : > { %541 = vmatpush.bf16.msra.mxu2 %v859_v61 }
  0xca   : > { %v470_v1 = vsel %vm469_vm5, %v461_v63, %v468_v0 }
  0xcb   : > { %v471_v3 = vadd.f32 %v470_v1, %v454_v62 }
  0xcd   : > { %472 = vst [vmem:[%s1105_s27] sm:$0x3] %v471_v3  ;;  %542 = vmatpush.bf16.msra.mxu2 %v858_v2 }
  0xd1   : > { %543 = vmatpush.bf16.msra.mxu2 %v857_v4 }
  0xd5   : > { %544 = vmatpush.bf16.msra.mxu2 %v856_v5 }
  0xd9   : > { %545 = vmatpush.bf16.msra.mxu2 %v855_v6 }
  0xdc   : > { %546 = vmatmul.bf16.vlgmr.msra.gmra.mxu2 %v473_v7 }
 0x15f   : > { %v547_v8 = vpop.f32.mrf.mxu2 }
 0x167   : > { %v549_v9 = vpop.f32.mrf.mxu2 }
 0x168   : > { %v866_v10 = vpack.c.bf16 %v549_v9, %v547_v8 }
 0x16a   : > { %867 = vst [vmem:[%s1100_s17] sm:$0xff] %v866_v10  }
 0x16b PF: > { %s16_s24 = sadd.s32 1, %s983_s24   ;;  %s1169_s27 = sld [smem:[#allocation2_spill]] }
 0x16c   : > { %p13_p10 = scmp.ge.s32.totalorder %s16_s24, 10   ;;  %s1170_s18 = smov %s971_s21 }
 0x16d   : > { %s1171_s19 = smov %s975_s22  ;;  %s1172_s20 = smov %s979_s23 }
 0x16e   : > { %s1173_s21 = smov %s1177_s25  ;;  %s1174_s22 = smov %s1181_s26 }
 0x16f   :  { %15 = sbr.rel (!%p13_p10) target bundleno = 4 (0x4), region = 90 }
 0x171   : > { %s1175_s23 = smov %s1169_s27 }

</bundles_post_ra>
